<compile_context>
chip_gen: v7x
topology: tpu7x:2x2x1
jax: 0.10.0
libtpu: 0.0.40
codegen_flags: <defaults>
</compile_context>

<pallas_src>
import jax
import jax.numpy as jnp
from jax.experimental import pallas as pl
from jax.experimental.pallas import tpu as pltpu


def _and_prod_kernel(x_ref, o_ref):
    # x_ref: (TB, C, TF) VMEM tile; o_ref: (TB, TF) VMEM tile.
    # Product over the children axis as an unrolled chain of full-slab
    # VPU multiplies (C is a trace-time constant).
    C = x_ref.shape[1]
    acc = x_ref[:, 0, :]
    for c in range(1, C):
        acc = acc * x_ref[:, c, :]
    o_ref[...] = acc


def _prod_over_children(x: jax.Array) -> jax.Array:
    """x: (B, C, F) -> (B, F), product over axis 1 via a tiled Pallas kernel."""
    B, C, F = x.shape
    itemsize = jnp.dtype(x.dtype).itemsize

    # Pack up to 8 batch rows per tile so output stores are sublane-dense.
    TB = 8 if B >= 8 else B

    # ~2 MiB per input buffer: 2x(in) + 2x(out) double-buffered stays well
    # under the 16 MiB scoped-VMEM default (v5e) and v7x's 64 MiB physical VMEM.
    target_bytes = 2 * 1024 * 1024
    tf = (target_bytes // max(1, TB * C * itemsize)) // 128 * 128
    tf = max(tf, 128)
    if tf >= F:
        tf = F  # a block equal to the full dim is always a legal block shape

    grid = (pl.cdiv(B, TB), pl.cdiv(F, tf))

    return pl.pallas_call(
        _and_prod_kernel,
        out_shape=jax.ShapeDtypeStruct((B, F), x.dtype),
        grid=grid,
        in_specs=[pl.BlockSpec((TB, C, tf), lambda bi, fi: (bi, 0, fi))],
        out_specs=pl.BlockSpec((TB, tf), lambda bi, fi: (bi, fi)),
        compiler_params=pltpu.CompilerParams(
            dimension_semantics=("parallel", "parallel")
        ),
    )(x)


def iterative_and_node_forward(child_outputs: jax.Array) -> jax.Array:
    """Pallas equivalent of IterativeANDNode.forward.

    child_outputs: (B, C, *spatial) -> (B, 1, *spatial)
    Also supports plain 2-D (B, C) inputs -> (B, 1).
    """
    shape = child_outputs.shape
    B, C = shape[0], shape[1]

    if C == 0:
        # Empty product = 1 (matches torch.prod over an empty dim).
        return jnp.ones((B, 1) + shape[2:], dtype=child_outputs.dtype)

    if child_outputs.ndim == 2:
        # Put B on the lane axis; an (B, C, 1) view would give F=1 (pathological).
        xt = child_outputs.T.reshape(1, C, B)
        return _prod_over_children(xt).reshape(B, 1)

    F = 1
    for d in shape[2:]:
        F *= d
    x = child_outputs.reshape(B, C, F)
    out = _prod_over_children(x)  # (B, F)
    return out.reshape((B, 1) + shape[2:])


if __name__ == "__main__":
    # IterativeANDNode has no learnable parameters; children_nodes only affect
    # how `child_outputs` was produced upstream, not this forward pass.
    key = jax.random.PRNGKey(0)
    k1, k2 = jax.random.split(key)

    # 4-D NCHW case (canonical): C = number of child nodes.
    B, C, H, W = 2, 4, 16, 16
    child_outputs = jax.random.uniform(k1, (B, C, H, W), dtype=jnp.float32)
    result = jax.block_until_ready(iterative_and_node_forward(child_outputs))
    ref = jnp.prod(child_outputs, axis=1, keepdims=True)
    assert result.shape == (B, 1, H, W), result.shape
    assert jnp.allclose(result, ref, rtol=1e-6, atol=1e-6), "4-D mismatch vs reference"

    # 2-D case (B on lane axis path).
    x2 = jax.random.uniform(k2, (4, 3), dtype=jnp.float32)
    r2 = jax.block_until_ready(iterative_and_node_forward(x2))
    ref2 = jnp.prod(x2, axis=1, keepdims=True)
    assert r2.shape == (4, 1), r2.shape
    assert jnp.allclose(r2, ref2, rtol=1e-6, atol=1e-6), "2-D mismatch vs reference"

    print("KERNEL_OK")
</pallas_src>

<mosaic_0001>
module attributes {stable_mosaic.version = 11 : i64} {
  func.func @_and_prod_kernel(%arg0: i32, %arg1: i32, %arg2: memref<2x4x256xf32, #tpu.memory_space<vmem>>, %arg3: memref<2x256xf32, #tpu.memory_space<vmem>>) attributes {dimension_semantics = [#tpu.dimension_semantics<parallel>, #tpu.dimension_semantics<parallel>], iteration_bounds = array<i64: 1, 1>, scalar_prefetch = 0 : i64, scratch_operands = 0 : i64, tpu.core_type = #tpu.core_type<tc>, window_params = [{transform_indices = @transform_0, window_bounds = array<i64: 2, 4, 256>}, {transform_indices = @transform_1, window_bounds = array<i64: 2, 256>}]} {
    %c0 = arith.constant 0 : index
    %c0_0 = arith.constant 0 : index
    %c0_1 = arith.constant 0 : index
    %0 = vector.load %arg2[%c0, %c0_0, %c0_1] : memref<2x4x256xf32, #tpu.memory_space<vmem>>, vector<2x1x256xf32>
    %1 = vector.shape_cast %0 : vector<2x1x256xf32> to vector<2x256xf32>
    %c0_2 = arith.constant 0 : index
    %c1 = arith.constant 1 : index
    %c0_3 = arith.constant 0 : index
    %2 = vector.load %arg2[%c0_2, %c1, %c0_3] : memref<2x4x256xf32, #tpu.memory_space<vmem>>, vector<2x1x256xf32>
    %3 = vector.shape_cast %2 : vector<2x1x256xf32> to vector<2x256xf32>
    %4 = arith.mulf %1, %3 : vector<2x256xf32>
    %c0_4 = arith.constant 0 : index
    %c2 = arith.constant 2 : index
    %c0_5 = arith.constant 0 : index
    %5 = vector.load %arg2[%c0_4, %c2, %c0_5] : memref<2x4x256xf32, #tpu.memory_space<vmem>>, vector<2x1x256xf32>
    %6 = vector.shape_cast %5 : vector<2x1x256xf32> to vector<2x256xf32>
    %7 = arith.mulf %4, %6 : vector<2x256xf32>
    %c0_6 = arith.constant 0 : index
    %c3 = arith.constant 3 : index
    %c0_7 = arith.constant 0 : index
    %8 = vector.load %arg2[%c0_6, %c3, %c0_7] : memref<2x4x256xf32, #tpu.memory_space<vmem>>, vector<2x1x256xf32>
    %9 = vector.shape_cast %8 : vector<2x1x256xf32> to vector<2x256xf32>
    %10 = arith.mulf %7, %9 : vector<2x256xf32>
    %c0_8 = arith.constant 0 : index
    %c0_9 = arith.constant 0 : index
    %11 = vector.load %arg3[%c0_8, %c0_9] : memref<2x256xf32, #tpu.memory_space<vmem>>, vector<2x256xf32>
    tpu.vector_store %arg3[%c0_8, %c0_9], %10 {strides = array<i32>} : memref<2x256xf32, #tpu.memory_space<vmem>>, vector<2x256xf32>,
    return
  }
  func.func @transform_0(%arg0: i32, %arg1: i32) -> (i32, i32, i32) {
    %c0_i32 = arith.constant 0 : i32
    %c0_i32_0 = arith.constant 0 : i32
    return %arg0, %c0_i32, %arg1 : i32, i32, i32
  }
  func.func @transform_1(%arg0: i32, %arg1: i32) -> (i32, i32) {
    %c0_i32 = arith.constant 0 : i32
    return %arg0, %arg1 : i32, i32
  }
}

</mosaic_0001>

<bundles_post_ra>
// kernel: tpu_custom_call.1
= control target key start
LH: loop header
LB: loop body
LE: loop exit
PB: predicated region body
PF: predicated region fallthrough
CT: control target
= control target key end

     0   :  { %6 = vsyncpa [#allocation3], 0  ;;  %s162_s0 = inlined_call_operand.hbm [shape: f32[2,4,256], index: 0, kind: input, shape index: {}]   ;;  %s163_s1 = inlined_call_operand.hbm [shape: f32[2,256], index: 1, kind: output, shape index: {}]  }
   0x1   :  { %7 = vsyncpa [#allocation4], 0  ;;  %s124_s6 = smov [#allocation2]   ;;  %s76_s10 = scalar_lea.hbm %s162_s0, 256 }
   0x2   :  { %s13_s7 = sshll.u32 %s124_s6, 4  ;;  %p77_p0 = scmp.ne.s32.totalorder %s162_s0, %s76_s10  ;;  %s14_s7 = int_to_ptr.vmem [resolvable:$true] %s13_s7 }
   0x3   :  { %p80_p1 = scmp.lt.u32.totalorder %s76_s10, %s162_s0 }
   0x5   :  { %p82_p2 = pnand %p80_p1, %p77_p0 }
   0x7   :  { %85 = shalt.err (!%p82_p2)
}
   0x8   :  { %s86_s15 = scalar_lea.vmem %s14_s7, 256  ;;  %p91_p4 = scmp.lt.s32.totalorder %s14_s7, %s14_s7 }
   0x9   :  { %p87_p3 = scmp.ne.s32.totalorder %s14_s7, %s86_s15  ;;  %p92_p5 = scmp.lt.s32.totalorder %s86_s15, %s86_s15 }
   0xb   :  { %p93_p6 = por %p92_p5, %p91_p4 }
   0xd   :  { %p94_p7 = pnand %p93_p6, %p87_p3 }
   0xf   :  { %97 = shalt.err (!%p94_p7)
}
  0x10   :  { %s125_s16 = smov 128   ;;  %s126_s17 = smov 8  }
  0x11   :  { %19 = dma.hbm_to_vmem [thread:$0]  %s162_s0, 256, %s14_s7, [#allocation3], %s125_s16, %s125_s16, %s126_s17  }
  0x12   :  { %120 = dma.done.wait [#allocation3], 256  }
  0x13   :  { %121 = vsyncadd [#allocation3], 4294967040  ;;  %v23_v0 = vld [vmem:[#allocation2] ss:$4 sm:$0x3]  ;;  %s127_s20 = smov [#allocation5]  }
  0x14   :  { %v25_v1 = vld [vmem:[#allocation2 + $0x8] ss:$4 sm:$0x3]  ;;  %v27_v2 = vld [vmem:[#allocation2 + $0x1] ss:$4 sm:$0x3] }
  0x15   :  { %v29_v3 = vld [vmem:[#allocation2 + $0x9] ss:$4 sm:$0x3]  ;;  %v30_v4 = vmul.f32 %v27_v2, %v23_v0  ;;  %v33_v6 = vld [vmem:[#allocation2 + $0x2] ss:$4 sm:$0x3] }
  0x16   :  { %v31_v5 = vmul.f32 %v29_v3, %v25_v1  ;;  %v35_v7 = vld [vmem:[#allocation2 + $0xa] ss:$4 sm:$0x3]  ;;  %v39_v8 = vld [vmem:[#allocation2 + $0x3] ss:$4 sm:$0x3] }
  0x17   :  { %v41_v9 = vld [vmem:[#allocation2 + $0xb] ss:$4 sm:$0x3]  ;;  %v36_v10 = vmul.f32 %v33_v6, %v30_v4  ;;  %s62_s21 = sshll.u32 %s127_s20, 4  ;;  %s63_s21 = int_to_ptr.vmem [resolvable:$true] %s62_s21 }
  0x18   :  { %v37_v11 = vmul.f32 %v35_v7, %v31_v5  ;;  %s98_s0 = scalar_lea.vmem %s63_s21, 64  ;;  %p103_p9 = scmp.lt.s32.totalorder %s63_s21, %s63_s21 }
  0x19   :  { %v42_v12 = vmul.f32 %v39_v8, %v36_v10  ;;  %p99_p8 = scmp.ne.s32.totalorder %s63_s21, %s98_s0  ;;  %p104_p10 = scmp.lt.s32.totalorder %s98_s0, %s98_s0 }
  0x1a   :  { %v43_v13 = vmul.f32 %v41_v9, %v37_v11 }
  0x1b   :  { %p105_p11 = por %p104_p10, %p103_p9 }
  0x1c   :  { %v46_v14 = vcombine.low %v42_v12, %v43_v13 }
  0x1d   :  { %p106_p12 = pnand %p105_p11, %p99_p8 }
  0x1e   :  { %71 = vst.sshfl [vmem:[#allocation5] sm:$0x33 pattern:$0x75316420] %v46_v14 }
  0x1f   :  { %109 = shalt.err (!%p106_p12)
}
  0x20   :  { %s110_s24 = scalar_lea.hbm %s163_s1, 64 }
  0x21   :  { %p111_p13 = scmp.ne.s32.totalorder %s163_s1, %s110_s24  ;;  %p114_p0 = scmp.lt.u32.totalorder %s110_s24, %s163_s1 }
  0x23   :  { %p116_p1 = pnand %p114_p0, %p111_p13 }
  0x25   :  { %119 = shalt.err (!%p116_p1)
}
  0x26   :  { %65 = dma.vmem_to_hbm [thread:$0]  %s63_s21, 64, %s163_s1, [#allocation4]  }
  0x27   :  { %122 = dma.done.wait [#allocation4], 64  }
  0x28   :  { %123 = vsyncadd [#allocation4], 4294967232 }
  0x29   :  { %69 = vsyncpa [#allocation3], 1 }
  0x2a   :  { %70 = vsyncpa [#allocation4], 1 }

</bundles_post_ra>
